<compile_context>
chip_gen: v7x
topology: tpu7x:2x2x1
jax: 0.10.0
libtpu: 0.0.40
codegen_flags: <defaults>
</compile_context>

<pallas_src>
import jax
import jax.numpy as jnp
from jax.experimental import pallas as pl
from jax.experimental.pallas import tpu as pltpu

EPS = 1e-5
LANES = 128


def _sublane_base(dtype):
    return {4: 8, 2: 16, 1: 32}.get(jnp.dtype(dtype).itemsize, 8)


def _pick_tile(total, base, max_elems):
    """Largest multiple of `base` that divides `total` and is <= max_elems.

    Falls back to the full dimension when `total` is not a multiple of `base`
    (Pallas allows block dim == full array dim)."""
    if total % base != 0:
        return total
    t = max(base, (min(total, max_elems) // base) * base)
    while total % t != 0:
        t -= base
    return t


def _pick_2d_tiles(nc, hw, itemsize, sub, nc_cap, byte_cap, hw_elem_cap=None):
    nc_t = _pick_tile(nc, sub, nc_cap)
    hw_cap = max(LANES, byte_cap // max(nc_t * itemsize, 1))
    if hw_elem_cap is not None:
        hw_cap = min(hw_cap, hw_elem_cap)
    hw_t = _pick_tile(hw, LANES, hw_cap)
    # Bound the full-dim fallback: if hw_t blew past the byte cap (HW not a
    # multiple of 128), shrink the sublane tile to compensate.
    if nc_t * hw_t * itemsize > byte_cap:
        nc_t = _pick_tile(nc, sub, max(sub, byte_cap // max(hw_t * itemsize, 1)))
    return nc_t, hw_t


def _vmem_limit(buffers):
    """buffers: iterable of (elems, itemsize) for each pipelined (double-buffered) array."""
    need = sum(2 * e * s for e, s in buffers)
    return int(min(max(int(need * 1.5) + (4 << 20), 16 << 20), 40 << 20))


def stats_kernel(x_ref, sum_ref, sq_ref):
    """Per-(i, j) lane-parallel partial sum / sum-of-squares of one x tile."""
    nc_t, hw_t = x_ref.shape
    lanes = sum_ref.shape[-1]
    if lanes == 1:
        # HW not a multiple of 128: single cross-lane reduce of the whole tile.
        x = x_ref[...].astype(jnp.float32)
        sum_ref[...] = jnp.sum(x, axis=1, keepdims=True)
        sq_ref[...] = jnp.sum(x * x, axis=1, keepdims=True)
    else:
        # Pure VPU: accumulate 128-lane-wide partials in vregs; no XLU reduce,
        # no masked stores.  Chunk count is bounded by the tile picker, so a
        # full Python unroll stays small and gives the scheduler visibility.
        acc_s = jnp.zeros((nc_t, lanes), jnp.float32)
        acc_q = jnp.zeros((nc_t, lanes), jnp.float32)
        for k in range(hw_t // lanes):
            c = x_ref[:, k * lanes:(k + 1) * lanes].astype(jnp.float32)
            acc_s = acc_s + c
            acc_q = acc_q + c * c
        sum_ref[...] = acc_s
        sq_ref[...] = acc_q


def norm_kernel(a_ref, c_ref, x_ref, out_ref):
    """Fused BN + conditioning: out = a * x + c  (a, c per (n, c) row)."""
    x = x_ref[...].astype(jnp.float32)
    out_ref[...] = (a_ref[...] * x + c_ref[...]).astype(out_ref.dtype)


def conditional_bn(x_nchw, class_id, weight, bias, *, eps=EPS):
    """x_nchw: (N,C,H,W); class_id: (N,K); weight: (2C,K); bias: (2C,)."""
    N, C, H, W = x_nchw.shape
    NC, HW = N * C, H * W
    x2 = x_nchw.reshape(NC, HW)          # contiguous reshape: no data movement

    item = jnp.dtype(x_nchw.dtype).itemsize
    sub = _sublane_base(x_nchw.dtype)
    x_bytes = NC * HW * item

    # ---------- pass 1: lane-parallel partial sums (single read of x) ----------
    # Modest sublane tile keeps the two (nc_t, 128) vreg accumulators + a chunk
    # well under the 64-vreg budget; lane tile is byte-capped (~4 MiB) and
    # chunk-capped (<= 128 fully unrolled 128-lane chunks).
    nc_t1, hw_t1 = _pick_2d_tiles(NC, HW, item, sub,
                                  nc_cap=64, byte_cap=4 << 20,
                                  hw_elem_cap=LANES * 128)
    g_nc1, g_hw1 = NC // nc_t1, HW // hw_t1
    lanes1 = LANES if hw_t1 % LANES == 0 else 1

    vmem1 = _vmem_limit([(nc_t1 * hw_t1, item),
                         (nc_t1 * lanes1, 4),
                         (nc_t1 * lanes1, 4)])
    cost1 = pl.CostEstimate(flops=3 * NC * HW, transcendentals=0,
                            bytes_accessed=x_bytes + 2 * NC * g_hw1 * lanes1 * 4)

    sum_part, sq_part = pl.pallas_call(
        stats_kernel,
        out_shape=(jax.ShapeDtypeStruct((NC, g_hw1 * lanes1), jnp.float32),
                   jax.ShapeDtypeStruct((NC, g_hw1 * lanes1), jnp.float32)),
        grid=(g_nc1, g_hw1),
        in_specs=[pl.BlockSpec((nc_t1, hw_t1), lambda i, j: (i, j))],
        out_specs=(pl.BlockSpec((nc_t1, lanes1), lambda i, j: (i, j)),
                   pl.BlockSpec((nc_t1, lanes1), lambda i, j: (i, j))),
        compiler_params=pltpu.CompilerParams(
            dimension_semantics=("parallel", "parallel"),
            vmem_limit_bytes=vmem1),
        cost_estimate=cost1,
    )(x2)

    # ---------- tiny O(N*C) glue: finish reduction, fold BN + conditioning -----
    cnt = jnp.float32(N * HW)
    row_sum = sum_part.sum(axis=1)                          # (NC,)
    row_sq = sq_part.sum(axis=1)
    ch_sum = row_sum.reshape(N, C).sum(axis=0)
    ch_sq = row_sq.reshape(N, C).sum(axis=0)
    mean = ch_sum / cnt
    var = jnp.maximum(ch_sq / cnt - mean * mean, 0.0)       # biased variance
    inv = jax.lax.rsqrt(var + eps)

    embed = (class_id.astype(jnp.float32) @ weight.astype(jnp.float32).T
             + bias.astype(jnp.float32))                    # (N, 2C); K ~ 6, hoisted
    gamma, beta = embed[:, :C], embed[:, C:]
    scale = gamma * inv[None, :]                            # (N, C)
    a = scale.reshape(NC, 1)
    c = (beta - scale * mean[None, :]).reshape(NC, 1)

    # ---------- pass 2: out = a * x + c (mem-bound, lane-dense, fully parallel) -
    nc_t2, hw_t2 = _pick_2d_tiles(NC, HW, item, sub, nc_cap=256, byte_cap=4 << 20)
    g_nc2, g_hw2 = NC // nc_t2, HW // hw_t2

    vmem2 = _vmem_limit([(nc_t2 * hw_t2, item), (nc_t2 * hw_t2, item),
                         (nc_t2, 4), (nc_t2, 4)])
    cost2 = pl.CostEstimate(flops=2 * NC * HW, transcendentals=0,
                            bytes_accessed=2 * x_bytes + 2 * NC * 4)

    # NOTE: input_output_aliases={2: 0} would save one HBM allocation, but callers
    # of this demo reuse x afterwards, so the output stays a separate buffer.
    out2 = pl.pallas_call(
        norm_kernel,
        out_shape=jax.ShapeDtypeStruct((NC, HW), x_nchw.dtype),
        grid=(g_nc2, g_hw2),
        in_specs=[pl.BlockSpec((nc_t2, 1), lambda i, j: (i, 0)),
                  pl.BlockSpec((nc_t2, 1), lambda i, j: (i, 0)),
                  pl.BlockSpec((nc_t2, hw_t2), lambda i, j: (i, j))],
        out_specs=pl.BlockSpec((nc_t2, hw_t2), lambda i, j: (i, j)),
        compiler_params=pltpu.CompilerParams(
            dimension_semantics=("parallel", "parallel"),
            vmem_limit_bytes=vmem2),
        cost_estimate=cost2,
    )(a, c, x2)

    return out2.reshape(N, C, H, W)


def reference(x_nchw, class_id, weight, bias):
    """Pure-JAX reference mirroring the PyTorch forward."""
    C = x_nchw.shape[1]
    mean = jnp.mean(x_nchw, axis=(0, 2, 3), keepdims=True)
    var = jnp.var(x_nchw, axis=(0, 2, 3), keepdims=True)
    bn = (x_nchw - mean) / jnp.sqrt(var + EPS)
    embed = class_id @ weight.T + bias
    gamma = embed[:, :C][:, :, None, None]
    beta = embed[:, C:][:, :, None, None]
    return gamma * bn + beta


if __name__ == "__main__":
    N, C, H, W = 2, 4, 16, 16
    n_condition = 6

    key = jax.random.PRNGKey(0)
    kx, kc, kb = jax.random.split(key, 3)

    x = jax.random.normal(kx, (N, C, H, W), dtype=jnp.float32)
    class_id = jax.random.normal(kc, (N, n_condition), dtype=jnp.float32)

    # Deterministic parameter init matching the module's __init__:
    #   embed.weight[:, :in_channel] = 1 ; embed.weight[:, in_channel:] = 0
    weight = jnp.zeros((2 * C, n_condition), dtype=jnp.float32).at[:, :C].set(1.0)
    bound = 1.0 / float(n_condition) ** 0.5
    bias = jax.random.uniform(kb, (2 * C,), dtype=jnp.float32,
                              minval=-bound, maxval=bound)

    out = jax.block_until_ready(conditional_bn(x, class_id, weight, bias))
    ref = reference(x, class_id, weight, bias)

    assert out.shape == (N, C, H, W)
    assert jnp.allclose(out, ref, atol=1e-4, rtol=1e-4), \
        float(jnp.max(jnp.abs(out - ref)))

    print("KERNEL_OK")
</pallas_src>

<mosaic_0001>
module attributes {stable_mosaic.version = 11 : i64} {
  func.func @stats_kernel(%arg0: i32, %arg1: i32, %arg2: memref<8x256xf32, #tpu.memory_space<vmem>>, %arg3: memref<8x128xf32, #tpu.memory_space<vmem>>, %arg4: memref<8x128xf32, #tpu.memory_space<vmem>>) attributes {dimension_semantics = [#tpu.dimension_semantics<parallel>, #tpu.dimension_semantics<parallel>], iteration_bounds = array<i64: 1, 1>, scalar_prefetch = 0 : i64, scratch_operands = 0 : i64, tpu.core_type = #tpu.core_type<tc>, window_params = [{transform_indices = @transform_0, window_bounds = array<i64: 8, 256>}, {transform_indices = @transform_1, window_bounds = array<i64: 8, 128>}, {transform_indices = @transform_2, window_bounds = array<i64: 8, 128>}]} {
    %cst = arith.constant 0.000000e+00 : f32
    %0 = vector.broadcast %cst : f32 to vector<8x128xf32>
    %cst_0 = arith.constant 0.000000e+00 : f32
    %1 = vector.broadcast %cst_0 : f32 to vector<8x128xf32>
    %c0 = arith.constant 0 : index
    %c0_1 = arith.constant 0 : index
    %2 = vector.load %arg2[%c0, %c0_1] : memref<8x256xf32, #tpu.memory_space<vmem>>, vector<8x128xf32>
    %3 = arith.addf %0, %2 : vector<8x128xf32>
    %4 = arith.mulf %2, %2 : vector<8x128xf32>
    %5 = arith.addf %1, %4 : vector<8x128xf32>
    %c0_2 = arith.constant 0 : index
    %c128 = arith.constant 128 : index
    %6 = vector.load %arg2[%c0_2, %c128] : memref<8x256xf32, #tpu.memory_space<vmem>>, vector<8x128xf32>
    %7 = arith.addf %3, %6 : vector<8x128xf32>
    %8 = arith.mulf %6, %6 : vector<8x128xf32>
    %9 = arith.addf %5, %8 : vector<8x128xf32>
    %c0_3 = arith.constant 0 : index
    %c0_4 = arith.constant 0 : index
    %10 = vector.load %arg3[%c0_3, %c0_4] : memref<8x128xf32, #tpu.memory_space<vmem>>, vector<8x128xf32>
    tpu.vector_store %arg3[%c0_3, %c0_4], %7 {strides = array<i32>} : memref<8x128xf32, #tpu.memory_space<vmem>>, vector<8x128xf32>,
    %c0_5 = arith.constant 0 : index
    %c0_6 = arith.constant 0 : index
    %11 = vector.load %arg4[%c0_5, %c0_6] : memref<8x128xf32, #tpu.memory_space<vmem>>, vector<8x128xf32>
    tpu.vector_store %arg4[%c0_5, %c0_6], %9 {strides = array<i32>} : memref<8x128xf32, #tpu.memory_space<vmem>>, vector<8x128xf32>,
    return
  }
  func.func @transform_0(%arg0: i32, %arg1: i32) -> (i32, i32) {
    %c0_i32 = arith.constant 0 : i32
    return %arg0, %arg1 : i32, i32
  }
  func.func @transform_1(%arg0: i32, %arg1: i32) -> (i32, i32) {
    %c0_i32 = arith.constant 0 : i32
    return %arg0, %arg1 : i32, i32
  }
  func.func @transform_2(%arg0: i32, %arg1: i32) -> (i32, i32) {
    %c0_i32 = arith.constant 0 : i32
    return %arg0, %arg1 : i32, i32
  }
}

</mosaic_0001>

<bundles_post_ra>
// kernel: tpu_custom_call.1
= control target key start
LH: loop header
LB: loop body
LE: loop exit
PB: predicated region body
PF: predicated region fallthrough
CT: control target
= control target key end

     0   :  { %8 = vsyncpa [#allocation3], 0  ;;  %s192_s0 = inlined_call_operand.hbm [shape: f32[8,256], index: 0, kind: input, shape index: {}]   ;;  %s193_s1 = inlined_call_operand.hbm [shape: f32[8,128], index: 1, kind: output, shape index: {0}]   ;;  %s194_s2 = inlined_call_operand.hbm [shape: f32[8,128], index: 2, kind: output, shape index: {1}]  }
   0x1   :  { %9 = vsyncpa [#allocation4], 0 }
   0x2   :  { %10 = vsyncpa [#allocation7], 0  ;;  %s138_s9 = smov [#allocation2]   ;;  %s66_s13 = scalar_lea.hbm %s192_s0, 256 }
   0x3   :  { %s17_s10 = sshll.u32 %s138_s9, 4  ;;  %p67_p0 = scmp.ne.s32.totalorder %s192_s0, %s66_s13  ;;  %s18_s10 = int_to_ptr.vmem [resolvable:$true] %s17_s10 }
   0x4   :  { %p70_p1 = scmp.lt.u32.totalorder %s66_s13, %s192_s0 }
   0x6   :  { %p72_p2 = pnand %p70_p1, %p67_p0 }
   0x8   :  { %75 = shalt.err (!%p72_p2)
}
   0x9   :  { %s76_s18 = scalar_lea.vmem %s18_s10, 256  ;;  %p81_p4 = scmp.lt.s32.totalorder %s18_s10, %s18_s10 }
   0xa   :  { %p77_p3 = scmp.ne.s32.totalorder %s18_s10, %s76_s18  ;;  %p82_p5 = scmp.lt.s32.totalorder %s76_s18, %s76_s18 }
   0xc   :  { %p83_p6 = por %p82_p5, %p81_p4 }
   0xe   :  { %p84_p7 = pnand %p83_p6, %p77_p3 }
  0x10   :  { %87 = shalt.err (!%p84_p7)
}
  0x11   :  { %20 = dma.hbm_to_vmem [thread:$0]  %s192_s0, 256, %s18_s10, [#allocation3]  }
  0x12   :  { %132 = dma.done.wait [#allocation3], 256  }
  0x13   :  { %133 = vsyncadd [#allocation3], 4294967040  ;;  %s139_s21 = smov [#allocation5]   ;;  %v24_v0 = vld [vmem:[#allocation2] sm:$0xff]  ;;  %v28_v1 = vld [vmem:[#allocation2 + $0x8] sm:$0xff]  ;;  %s140_s23 = smov [#allocation6]  }
  0x14   :  { %s40_s22 = sshll.u32 %s139_s21, 4  ;;  %s50_s24 = sshll.u32 %s140_s23, 4  ;;  %v29_v2 = vadd.f32 %v28_v1, %v24_v0  ;;  %v26_v3 = vmul.f32 %v24_v0, %v24_v0  ;;  %v30_v4 = vmul.f32 %v28_v1, %v28_v1  ;;  %s41_s22 = int_to_ptr.vmem [resolvable:$true] %s40_s22  ;;  %s51_s24 = int_to_ptr.vmem [resolvable:$true] %s50_s24 }
  0x15   :  { %s88_s25 = scalar_lea.vmem %s41_s22, 128  ;;  %p93_p9 = scmp.lt.s32.totalorder %s41_s22, %s41_s22 }
  0x16   :  { %32 = vst [vmem:[#allocation5] sm:$0xff] %v29_v2  ;;  %v31_v5 = vadd.f32 %v30_v4, %v26_v3  ;;  %p89_p8 = scmp.ne.s32.totalorder %s41_s22, %s88_s25  ;;  %p94_p10 = scmp.lt.s32.totalorder %s88_s25, %s88_s25 }
  0x18   :  { %p95_p11 = por %p94_p10, %p93_p9 }
  0x1a   :  { %p96_p12 = pnand %p95_p11, %p89_p8 }
  0x1c   :  { %99 = shalt.err (!%p96_p12)
}
  0x1d   :  { %s100_s27 = scalar_lea.hbm %s193_s1, 128 }
  0x1e   :  { %p101_p13 = scmp.ne.s32.totalorder %s193_s1, %s100_s27  ;;  %p104_p0 = scmp.lt.u32.totalorder %s100_s27, %s193_s1 }
  0x20   :  { %p106_p1 = pnand %p104_p0, %p101_p13 }
  0x22   :  { %109 = shalt.err (!%p106_p1)
}
  0x23   :  { %43 = dma.vmem_to_hbm [thread:$0]  %s41_s22, 128, %s193_s1, [#allocation4]   ;;  %33 = vst [vmem:[#allocation6] sm:$0xff] %v31_v5 }
  0x24   :  { %s110_s6 = scalar_lea.vmem %s51_s24, 128  ;;  %p115_p3 = scmp.lt.s32.totalorder %s51_s24, %s51_s24 }
  0x25   :  { %p111_p2 = scmp.ne.s32.totalorder %s51_s24, %s110_s6  ;;  %p116_p4 = scmp.lt.s32.totalorder %s110_s6, %s110_s6 }
  0x27   :  { %p117_p5 = por %p116_p4, %p115_p3 }
  0x29   :  { %p118_p6 = pnand %p117_p5, %p111_p2 }
  0x2b   :  { %121 = shalt.err (!%p118_p6)
}
  0x2c   :  { %s122_s9 = scalar_lea.hbm %s194_s2, 128 }
  0x2d   :  { %p123_p7 = scmp.ne.s32.totalorder %s194_s2, %s122_s9  ;;  %p126_p8 = scmp.lt.u32.totalorder %s122_s9, %s194_s2 }
  0x2f   :  { %p128_p9 = pnand %p126_p8, %p123_p7 }
  0x31   :  { %131 = shalt.err (!%p128_p9)
}
  0x32   :  { %53 = dma.vmem_to_hbm [thread:$0]  %s51_s24, 128, %s194_s2, [#allocation7]  }
  0x33   :  { %134 = dma.done.wait [#allocation4], 128  }
  0x34   :  { %135 = vsyncadd [#allocation4], 4294967168 }
  0x35   :  { %136 = dma.done.wait [#allocation7], 128  }
  0x36   :  { %137 = vsyncadd [#allocation7], 4294967168 }
  0x37   :  { %60 = vsyncpa [#allocation3], 1 }
  0x38   :  { %61 = vsyncpa [#allocation4], 1 }
  0x39   :  { %62 = vsyncpa [#allocation7], 1 }

</bundles_post_ra>
